<compile_context>
chip_gen: v6e
topology: v6e:2x2x1
jax: 0.10.0
libtpu: 0.0.40
codegen_flags: <defaults>
</compile_context>

<pallas_src>
import functools

import jax
import jax.numpy as jnp
from jax.experimental import pallas as pl
from jax.experimental.pallas import tpu as pltpu

M = 2                      # quantization levels (as in the PyTorch module)
IN_F, H1, H2 = 784, 256, 128
K_PAD = 896                # 7 * 128: fc1 contraction dim padded to full lanes
NUM_CLASSES = 10
NC_PAD = 128               # class dim padded to one full 128-lane register
BN_EPS = 1e-5
NEG_BIG = -1e30            # baked into padded fc3 bias entries (masks pad lanes)


# ---------------------------------------------------------------------------
# One-time (init) parameter preparation: quantize, cast, transpose, pad.
# ---------------------------------------------------------------------------
def _quantize_f32(w, levels, partitions):
    """M=2 Quantize() weight path: <= partition -> level[0], > partition -> level[1].

    Reproduces the PyTorch loop's quirk: it implicitly assumes
    level[0] <= partition[0]; otherwise values first set to level[0] get
    overwritten to level[1] (same behavior as the reference).
    """
    l0, l1, p = levels[0], levels[1], partitions[0]
    wq = jnp.where(w > p, w, l0)
    wq = jnp.where(wq <= p, wq, l1)
    return wq
    # TODO(synk): Quantize() also returns flag / flag4grad; they only update
    # module attributes (self.index*) and never affect the forward output.


def prepare_params(params, num_classes=NUM_CLASSES):
    """Hoist every static transform out of the per-call path (run once)."""
    w1q = _quantize_f32(params["w1"], params["levels1"], params["partitions1"])
    w2q = _quantize_f32(params["w2"], params["levels2"], params["partitions2"])
    w3q = _quantize_f32(params["w3"], params["levels3"], params["partitions3"])

    # (out, in) -> (in, out) bf16; fc1 K padded to 896, fc3 N padded to 128.
    w1t = jnp.zeros((K_PAD, H1), jnp.bfloat16).at[:IN_F, :].set(
        w1q.T.astype(jnp.bfloat16))
    w2t = w2q.T.astype(jnp.bfloat16)                               # (256, 128)
    w3t = jnp.zeros((H2, NC_PAD), jnp.bfloat16).at[:, :num_classes].set(
        w3q.T.astype(jnp.bfloat16))

    # Padded bias entries carry -1e30 so padded logits are excluded from the
    # logsumexp with no in-kernel mask (padded w3 columns are zero).
    b3 = jnp.full((1, NC_PAD), NEG_BIG, jnp.float32).at[0, :num_classes].set(
        params["b3"].astype(jnp.float32))

    prep = dict(
        w1t=w1t, w2t=w2t, w3t=w3t, b3=b3,
        g1=params["g1"].reshape(1, H1).astype(jnp.float32),
        be1=params["be1"].reshape(1, H1).astype(jnp.float32),
        g2=params["g2"].reshape(1, H2).astype(jnp.float32),
        be2=params["be2"].reshape(1, H2).astype(jnp.float32),
    )
    # NB: fc1/fc2 biases are intentionally NOT included — train-mode BN
    # subtracts the batch mean immediately after the linear, cancelling them.
    return prep


# ---------------------------------------------------------------------------
# Kernel
# ---------------------------------------------------------------------------
def _bn_hardtanh(h, g, be, inv_b):
    """Train-mode BatchNorm1d (biased batch stats) folded to scale/shift + Hardtanh.

    One pass over h: var = E[h^2] - E[h]^2.  Kept in f32 on the VPU (bf16
    elementwise would add pack/unpack overhead on v5e).
    """
    mu = jnp.sum(h, axis=0, keepdims=True) * inv_b
    ex2 = jnp.sum(h * h, axis=0, keepdims=True) * inv_b
    var = jnp.maximum(ex2 - mu * mu, 0.0)
    scale = g * jax.lax.rsqrt(var + BN_EPS)
    shift = be - mu * scale
    return jnp.clip(h * scale + shift, -1.0, 1.0)      # nn.Hardtanh()
    # TODO(synk): PyTorch train-mode BN also updates running_mean/running_var
    # buffers; not materialized here (forward output is unaffected).


def threefc_kernel(x_ref,                       # (B, 896) bf16, zero-padded K
                   w1_ref, g1_ref, be1_ref,     # (896,256) bf16, (1,256) f32 x2
                   w2_ref, g2_ref, be2_ref,     # (256,128) bf16, (1,128) f32 x2
                   w3_ref, b3_ref,              # (128,128) bf16, (1,128) f32
                   o_ref):                      # (B, 128) f32
    # TODO(synk): when the batch axis is tiled, pass 1/total_B via SMEM instead
    # (block size will no longer equal the batch) and split BN into a stats
    # pass + normalize pass so the grid can be marked "parallel" (2 TCs on v7x).
    inv_b = jnp.float32(1.0 / x_ref.shape[0])

    # fc1 (pre-quantized bf16, bias cancelled by BN) -> BN1 -> Hardtanh
    h = jnp.dot(x_ref[...], w1_ref[...], preferred_element_type=jnp.float32)
    h = _bn_hardtanh(h, g1_ref[...], be1_ref[...], inv_b).astype(jnp.bfloat16)

    # fc2 -> BN2 -> Hardtanh
    h = jnp.dot(h, w2_ref[...], preferred_element_type=jnp.float32)
    h = _bn_hardtanh(h, g2_ref[...], be2_ref[...], inv_b).astype(jnp.bfloat16)

    # fc3 (class dim padded to 128 lanes; pad bias = -1e30) -> LogSoftmax(dim=1)
    logits = jnp.dot(h, w3_ref[...], preferred_element_type=jnp.float32)
    logits = logits + b3_ref[...]
    m = jnp.max(logits, axis=-1, keepdims=True)
    lse = jnp.log(jnp.sum(jnp.exp(logits - m), axis=-1, keepdims=True)) + m
    o_ref[...] = (logits - lse).astype(o_ref.dtype)


# ---------------------------------------------------------------------------
# Wrapper
# ---------------------------------------------------------------------------
@functools.partial(jax.jit, static_argnames="num_classes")
def threefc_forward(x, prep, *, num_classes=NUM_CLASSES):
    B = x.shape[0]
    # x.view(-1, 784) -> bf16 -> zero-pad K to 896, all in one fused op.
    x2d = jnp.zeros((B, K_PAD), jnp.bfloat16).at[:, :IN_F].set(
        x.reshape(B, IN_F).astype(jnp.bfloat16))

    vmem_args = (
        x2d,
        prep["w1t"], prep["g1"], prep["be1"],
        prep["w2t"], prep["g2"], prep["be2"],
        prep["w3t"], prep["b3"],
    )
    in_specs = [
        pl.BlockSpec(a.shape, lambda i, _nd=a.ndim: (0,) * _nd) for a in vmem_args
    ]

    out = pl.pallas_call(
        threefc_kernel,
        out_shape=jax.ShapeDtypeStruct((B, NC_PAD), jnp.float32),
        grid=(1,),
        in_specs=in_specs,
        out_specs=pl.BlockSpec((B, NC_PAD), lambda i: (0, 0)),
        compiler_params=pltpu.CompilerParams(
            dimension_semantics=("arbitrary",),
            vmem_limit_bytes=32 * 1024 * 1024,   # fits v7x's 64 MiB/TC budget
        ),
    )(*vmem_args)
    # TODO(synk): for realistic batch sizes, tile the batch axis (>=256 rows),
    # keep the three weight blocks resident across batch steps, and split BN
    # into stats + normalize passes; at small B one full block is fastest.

    return out[:, :num_classes]                  # drop padded classes


# ---------------------------------------------------------------------------
# Deterministic synthetic init (PyTorch-Linear-style uniform bounds)
# ---------------------------------------------------------------------------
def init_params(key, num_classes=NUM_CLASSES):
    ks = jax.random.split(key, 12)

    def lin(kw, kb, fan_in, fan_out):
        bound = 1.0 / jnp.sqrt(fan_in)
        w = jax.random.uniform(kw, (fan_out, fan_in), jnp.float32, -bound, bound)
        b = jax.random.uniform(kb, (fan_out,), jnp.float32, -bound, bound)
        return w, b

    w1, b1 = lin(ks[0], ks[1], IN_F, H1)
    w2, b2 = lin(ks[2], ks[3], H1, H2)
    w3, b3 = lin(ks[4], ks[5], H2, num_classes)

    return dict(
        w1=w1, b1=b1, w2=w2, b2=b2, w3=w3, b3=b3,   # b1/b2 kept for module parity (unused: BN cancels them)
        # BatchNorm affine params (synthetic deterministic values)
        g1=1.0 + 0.1 * jax.random.normal(ks[6], (H1,), jnp.float32),
        be1=0.1 * jax.random.normal(ks[7], (H1,), jnp.float32),
        g2=1.0 + 0.1 * jax.random.normal(ks[8], (H2,), jnp.float32),
        be2=0.1 * jax.random.normal(ks[9], (H2,), jnp.float32),
        # Quantization levels / partitions (uninitialized Parameters in PyTorch;
        # set deterministically here, with level[0] <= partition[0]).
        levels1=jnp.array([-0.05, 0.05], jnp.float32),
        partitions1=jnp.array([0.0], jnp.float32),
        levels2=jnp.array([-0.04, 0.06], jnp.float32),
        partitions2=jnp.array([0.01], jnp.float32),
        levels3=jnp.array([-0.06, 0.04], jnp.float32),
        partitions3=jnp.array([-0.01], jnp.float32),
    )


if __name__ == "__main__":
    key = jax.random.PRNGKey(0)
    k_params, k_x = jax.random.split(key)
    params = init_params(k_params, NUM_CLASSES)

    # One-time static prep (quantize + bf16 + transpose + pad); done at init,
    # never on the per-call path.
    prep = jax.tree_util.tree_map(
        jax.block_until_ready, prepare_params(params, NUM_CLASSES))

    # MNIST-like NCHW input that flattens to 784 features per sample.
    x = jax.random.normal(k_x, (8, 1, 28, 28), dtype=jnp.float32)

    out = jax.block_until_ready(threefc_forward(x, prep, num_classes=NUM_CLASSES))
    assert out.shape == (8, NUM_CLASSES)
    assert bool(jnp.all(jnp.isfinite(out)))
    print("KERNEL_OK")
</pallas_src>

<mosaic_0001>
module attributes {stable_mosaic.version = 11 : i64} {
  func.func @threefc_kernel(%arg0: i32, %arg1: memref<8x896xbf16, #tpu.memory_space<vmem>>, %arg2: memref<896x256xbf16, #tpu.memory_space<vmem>>, %arg3: memref<1x256xf32, #tpu.memory_space<vmem>>, %arg4: memref<1x256xf32, #tpu.memory_space<vmem>>, %arg5: memref<256x128xbf16, #tpu.memory_space<vmem>>, %arg6: memref<1x128xf32, #tpu.memory_space<vmem>>, %arg7: memref<1x128xf32, #tpu.memory_space<vmem>>, %arg8: memref<128x128xbf16, #tpu.memory_space<vmem>>, %arg9: memref<1x128xf32, #tpu.memory_space<vmem>>, %arg10: memref<8x128xf32, #tpu.memory_space<vmem>>) attributes {dimension_semantics = [#tpu.dimension_semantics<arbitrary>], iteration_bounds = array<i64: 1>, scalar_prefetch = 0 : i64, scratch_operands = 0 : i64, tpu.core_type = #tpu.core_type<tc>, window_params = [{pipeline_mode = #tpu.pipeline_mode<synchronous>, transform_indices = @transform_0, window_bounds = array<i64: 8, 896>}, {pipeline_mode = #tpu.pipeline_mode<synchronous>, transform_indices = @transform_1, window_bounds = array<i64: 896, 256>}, {pipeline_mode = #tpu.pipeline_mode<synchronous>, transform_indices = @transform_2, window_bounds = array<i64: 1, 256>}, {pipeline_mode = #tpu.pipeline_mode<synchronous>, transform_indices = @transform_3, window_bounds = array<i64: 1, 256>}, {pipeline_mode = #tpu.pipeline_mode<synchronous>, transform_indices = @transform_4, window_bounds = array<i64: 256, 128>}, {pipeline_mode = #tpu.pipeline_mode<synchronous>, transform_indices = @transform_5, window_bounds = array<i64: 1, 128>}, {pipeline_mode = #tpu.pipeline_mode<synchronous>, transform_indices = @transform_6, window_bounds = array<i64: 1, 128>}, {pipeline_mode = #tpu.pipeline_mode<synchronous>, transform_indices = @transform_7, window_bounds = array<i64: 128, 128>}, {pipeline_mode = #tpu.pipeline_mode<synchronous>, transform_indices = @transform_8, window_bounds = array<i64: 1, 128>}, {pipeline_mode = #tpu.pipeline_mode<synchronous>, transform_indices = @transform_9, window_bounds = array<i64: 8, 128>}]} {
    %c0 = arith.constant 0 : index
    %c0_0 = arith.constant 0 : index
    %0 = vector.load %arg1[%c0, %c0_0] : memref<8x896xbf16, #tpu.memory_space<vmem>>, vector<8x896xbf16>
    %c0_1 = arith.constant 0 : index
    %c0_2 = arith.constant 0 : index
    %1 = vector.load %arg2[%c0_1, %c0_2] : memref<896x256xbf16, #tpu.memory_space<vmem>>, vector<896x256xbf16>
    %cst = arith.constant dense<0.000000e+00> : vector<8x256xf32>
    %2 = tpu.matmul %0, %1, %cst {dimension_numbers = #tpu.dot_dimension_numbers<[1], [0], [0], [1], [0, 0, 1, 1], [], []>} : vector<8x896xbf16>, vector<896x256xbf16>, vector<8x256xf32> -> vector<8x256xf32>
    %c0_3 = arith.constant 0 : index
    %c0_4 = arith.constant 0 : index
    %3 = vector.load %arg3[%c0_3, %c0_4] : memref<1x256xf32, #tpu.memory_space<vmem>>, vector<1x256xf32>
    %c0_5 = arith.constant 0 : index
    %c0_6 = arith.constant 0 : index
    %4 = vector.load %arg4[%c0_5, %c0_6] : memref<1x256xf32, #tpu.memory_space<vmem>>, vector<1x256xf32>
    %cst_7 = arith.constant dense<0.000000e+00> : vector<256xf32>
    %5 = vector.multi_reduction <add>, %2, %cst_7 [0] : vector<8x256xf32> to vector<256xf32>
    %6 = vector.shape_cast %5 : vector<256xf32> to vector<1x256xf32>
    %cst_8 = arith.constant 1.250000e-01 : f32
    %7 = vector.broadcast %cst_8 : f32 to vector<1x256xf32>
    %8 = arith.mulf %6, %7 : vector<1x256xf32>
    %9 = arith.mulf %2, %2 : vector<8x256xf32>
    %cst_9 = arith.constant dense<0.000000e+00> : vector<256xf32>
    %10 = vector.multi_reduction <add>, %9, %cst_9 [0] : vector<8x256xf32> to vector<256xf32>
    %11 = vector.shape_cast %10 : vector<256xf32> to vector<1x256xf32>
    %cst_10 = arith.constant 1.250000e-01 : f32
    %12 = vector.broadcast %cst_10 : f32 to vector<1x256xf32>
    %13 = arith.mulf %11, %12 : vector<1x256xf32>
    %14 = arith.mulf %8, %8 : vector<1x256xf32>
    %15 = arith.subf %13, %14 : vector<1x256xf32>
    %cst_11 = arith.constant 0.000000e+00 : f32
    %16 = vector.broadcast %cst_11 : f32 to vector<1x256xf32>
    %17 = arith.maximumf %15, %16 : vector<1x256xf32>
    %cst_12 = arith.constant 9.99999974E-6 : f32
    %18 = vector.broadcast %cst_12 : f32 to vector<1x256xf32>
    %19 = arith.addf %17, %18 : vector<1x256xf32>
    %20 = math.rsqrt %19 : vector<1x256xf32>
    %21 = arith.mulf %3, %20 : vector<1x256xf32>
    %22 = arith.mulf %8, %21 : vector<1x256xf32>
    %23 = arith.subf %4, %22 : vector<1x256xf32>
    %24 = vector.broadcast %21 : vector<1x256xf32> to vector<8x256xf32>
    %25 = arith.mulf %2, %24 : vector<8x256xf32>
    %26 = vector.broadcast %23 : vector<1x256xf32> to vector<8x256xf32>
    %27 = arith.addf %25, %26 : vector<8x256xf32>
    %cst_13 = arith.constant -1.000000e+00 : f32
    %cst_14 = arith.constant 1.000000e+00 : f32
    %28 = vector.broadcast %cst_13 : f32 to vector<8x256xf32>
    %29 = arith.maximumf %28, %27 : vector<8x256xf32>
    %30 = vector.broadcast %cst_14 : f32 to vector<8x256xf32>
    %31 = arith.minimumf %30, %29 : vector<8x256xf32>
    %32 = arith.truncf %31 : vector<8x256xf32> to vector<8x256xbf16>
    %c0_15 = arith.constant 0 : index
    %c0_16 = arith.constant 0 : index
    %33 = vector.load %arg5[%c0_15, %c0_16] : memref<256x128xbf16, #tpu.memory_space<vmem>>, vector<256x128xbf16>
    %cst_17 = arith.constant dense<0.000000e+00> : vector<8x128xf32>
    %34 = tpu.matmul %32, %33, %cst_17 {dimension_numbers = #tpu.dot_dimension_numbers<[1], [0], [0], [1], [0, 0, 1, 1], [], []>} : vector<8x256xbf16>, vector<256x128xbf16>, vector<8x128xf32> -> vector<8x128xf32>
    %c0_18 = arith.constant 0 : index
    %c0_19 = arith.constant 0 : index
    %35 = vector.load %arg6[%c0_18, %c0_19] : memref<1x128xf32, #tpu.memory_space<vmem>>, vector<1x128xf32>
    %c0_20 = arith.constant 0 : index
    %c0_21 = arith.constant 0 : index
    %36 = vector.load %arg7[%c0_20, %c0_21] : memref<1x128xf32, #tpu.memory_space<vmem>>, vector<1x128xf32>
    %cst_22 = arith.constant dense<0.000000e+00> : vector<128xf32>
    %37 = vector.multi_reduction <add>, %34, %cst_22 [0] : vector<8x128xf32> to vector<128xf32>
    %38 = vector.shape_cast %37 : vector<128xf32> to vector<1x128xf32>
    %cst_23 = arith.constant 1.250000e-01 : f32
    %39 = vector.broadcast %cst_23 : f32 to vector<1x128xf32>
    %40 = arith.mulf %38, %39 : vector<1x128xf32>
    %41 = arith.mulf %34, %34 : vector<8x128xf32>
    %cst_24 = arith.constant dense<0.000000e+00> : vector<128xf32>
    %42 = vector.multi_reduction <add>, %41, %cst_24 [0] : vector<8x128xf32> to vector<128xf32>
    %43 = vector.shape_cast %42 : vector<128xf32> to vector<1x128xf32>
    %cst_25 = arith.constant 1.250000e-01 : f32
    %44 = vector.broadcast %cst_25 : f32 to vector<1x128xf32>
    %45 = arith.mulf %43, %44 : vector<1x128xf32>
    %46 = arith.mulf %40, %40 : vector<1x128xf32>
    %47 = arith.subf %45, %46 : vector<1x128xf32>
    %cst_26 = arith.constant 0.000000e+00 : f32
    %48 = vector.broadcast %cst_26 : f32 to vector<1x128xf32>
    %49 = arith.maximumf %47, %48 : vector<1x128xf32>
    %cst_27 = arith.constant 9.99999974E-6 : f32
    %50 = vector.broadcast %cst_27 : f32 to vector<1x128xf32>
    %51 = arith.addf %49, %50 : vector<1x128xf32>
    %52 = math.rsqrt %51 : vector<1x128xf32>
    %53 = arith.mulf %35, %52 : vector<1x128xf32>
    %54 = arith.mulf %40, %53 : vector<1x128xf32>
    %55 = arith.subf %36, %54 : vector<1x128xf32>
    %56 = vector.broadcast %53 : vector<1x128xf32> to vector<8x128xf32>
    %57 = arith.mulf %34, %56 : vector<8x128xf32>
    %58 = vector.broadcast %55 : vector<1x128xf32> to vector<8x128xf32>
    %59 = arith.addf %57, %58 : vector<8x128xf32>
    %cst_28 = arith.constant -1.000000e+00 : f32
    %cst_29 = arith.constant 1.000000e+00 : f32
    %60 = vector.broadcast %cst_28 : f32 to vector<8x128xf32>
    %61 = arith.maximumf %60, %59 : vector<8x128xf32>
    %62 = vector.broadcast %cst_29 : f32 to vector<8x128xf32>
    %63 = arith.minimumf %62, %61 : vector<8x128xf32>
    %64 = arith.truncf %63 : vector<8x128xf32> to vector<8x128xbf16>
    %c0_30 = arith.constant 0 : index
    %c0_31 = arith.constant 0 : index
    %65 = vector.load %arg8[%c0_30, %c0_31] : memref<128x128xbf16, #tpu.memory_space<vmem>>, vector<128x128xbf16>
    %cst_32 = arith.constant dense<0.000000e+00> : vector<8x128xf32>
    %66 = tpu.matmul %64, %65, %cst_32 {dimension_numbers = #tpu.dot_dimension_numbers<[1], [0], [0], [1], [0, 0, 1, 1], [], []>} : vector<8x128xbf16>, vector<128x128xbf16>, vector<8x128xf32> -> vector<8x128xf32>
    %c0_33 = arith.constant 0 : index
    %c0_34 = arith.constant 0 : index
    %67 = vector.load %arg9[%c0_33, %c0_34] : memref<1x128xf32, #tpu.memory_space<vmem>>, vector<1x128xf32>
    %68 = vector.broadcast %67 : vector<1x128xf32> to vector<8x128xf32>
    %69 = arith.addf %66, %68 : vector<8x128xf32>
    %cst_35 = arith.constant dense<0xFF800000> : vector<8xf32>
    %70 = vector.multi_reduction <maximumf>, %69, %cst_35 [1] : vector<8x128xf32> to vector<8xf32>
    %71 = vector.shape_cast %70 : vector<8xf32> to vector<8x1xf32>
    %72 = vector.broadcast %71 : vector<8x1xf32> to vector<8x128xf32>
    %73 = arith.subf %69, %72 : vector<8x128xf32>
    %74 = math.exp %73 : vector<8x128xf32>
    %cst_36 = arith.constant dense<0.000000e+00> : vector<8xf32>
    %75 = vector.multi_reduction <add>, %74, %cst_36 [1] : vector<8x128xf32> to vector<8xf32>
    %76 = vector.shape_cast %75 : vector<8xf32> to vector<8x1xf32>
    %77 = math.log %76 : vector<8x1xf32>
    %78 = arith.addf %77, %71 : vector<8x1xf32>
    %79 = vector.broadcast %78 : vector<8x1xf32> to vector<8x128xf32>
    %80 = arith.subf %69, %79 : vector<8x128xf32>
    %c0_37 = arith.constant 0 : index
    %c0_38 = arith.constant 0 : index
    %81 = vector.load %arg10[%c0_37, %c0_38] : memref<8x128xf32, #tpu.memory_space<vmem>>, vector<8x128xf32>
    tpu.vector_store %arg10[%c0_37, %c0_38], %80 {strides = array<i32>} : memref<8x128xf32, #tpu.memory_space<vmem>>, vector<8x128xf32>,
    return
  }
  func.func @transform_0(%arg0: i32) -> (i32, i32) {
    %c0_i32 = arith.constant 0 : i32
    %c0_i32_0 = arith.constant 0 : i32
    %c0_i32_1 = arith.constant 0 : i32
    return %c0_i32, %c0_i32_0 : i32, i32
  }
  func.func @transform_1(%arg0: i32) -> (i32, i32) {
    %c0_i32 = arith.constant 0 : i32
    %c0_i32_0 = arith.constant 0 : i32
    %c0_i32_1 = arith.constant 0 : i32
    return %c0_i32, %c0_i32_0 : i32, i32
  }
  func.func @transform_2(%arg0: i32) -> (i32, i32) {
    %c0_i32 = arith.constant 0 : i32
    %c0_i32_0 = arith.constant 0 : i32
    %c0_i32_1 = arith.constant 0 : i32
    return %c0_i32, %c0_i32_0 : i32, i32
  }
  func.func @transform_3(%arg0: i32) -> (i32, i32) {
    %c0_i32 = arith.constant 0 : i32
    %c0_i32_0 = arith.constant 0 : i32
    %c0_i32_1 = arith.constant 0 : i32
    return %c0_i32, %c0_i32_0 : i32, i32
  }
  func.func @transform_4(%arg0: i32) -> (i32, i32) {
    %c0_i32 = arith.constant 0 : i32
    %c0_i32_0 = arith.constant 0 : i32
    %c0_i32_1 = arith.constant 0 : i32
    return %c0_i32, %c0_i32_0 : i32, i32
  }
  func.func @transform_5(%arg0: i32) -> (i32, i32) {
    %c0_i32 = arith.constant 0 : i32
    %c0_i32_0 = arith.constant 0 : i32
    %c0_i32_1 = arith.constant 0 : i32
    return %c0_i32, %c0_i32_0 : i32, i32
  }
  func.func @transform_6(%arg0: i32) -> (i32, i32) {
    %c0_i32 = arith.constant 0 : i32
    %c0_i32_0 = arith.constant 0 : i32
    %c0_i32_1 = arith.constant 0 : i32
    return %c0_i32, %c0_i32_0 : i32, i32
  }
  func.func @transform_7(%arg0: i32) -> (i32, i32) {
    %c0_i32 = arith.constant 0 : i32
    %c0_i32_0 = arith.constant 0 : i32
    %c0_i32_1 = arith.constant 0 : i32
    return %c0_i32, %c0_i32_0 : i32, i32
  }
  func.func @transform_8(%arg0: i32) -> (i32, i32) {
    %c0_i32 = arith.constant 0 : i32
    %c0_i32_0 = arith.constant 0 : i32
    %c0_i32_1 = arith.constant 0 : i32
    return %c0_i32, %c0_i32_0 : i32, i32
  }
  func.func @transform_9(%arg0: i32) -> (i32, i32) {
    %c0_i32 = arith.constant 0 : i32
    %c0_i32_0 = arith.constant 0 : i32
    %c0_i32_1 = arith.constant 0 : i32
    return %c0_i32, %c0_i32_0 : i32, i32
  }
}

</mosaic_0001>

<bundles_post_ra>
// kernel: threefc_forward.1
= control target key start
LH: loop header
LB: loop body
LE: loop exit
PB: predicated region body
PF: predicated region fallthrough
CT: control target
= control target key end

     0   :  { %14 = vsyncpa [#allocation3], 0  ;;  %s2023_s0 = inlined_call_operand.vmem [shape: bf16[8,896], index: 0, kind: input, shape index: {}]   ;;  %s2024_s1 = inlined_call_operand.hbm [shape: bf16[896,256], index: 1, kind: input, shape index: {}]   ;;  %s2025_s2 = inlined_call_operand.vmem [shape: f32[1,256], index: 2, kind: input, shape index: {}]   ;;  %s2026_s3 = inlined_call_operand.vmem [shape: f32[1,256], index: 3, kind: input, shape index: {}]   ;;  %s2027_s4 = inlined_call_operand.vmem [shape: bf16[256,128], index: 4, kind: input, shape index: {}]   ;;  %s2028_s5 = inlined_call_operand.vmem [shape: f32[1,128], index: 5, kind: input, shape index: {}]   ;;  %s2029_s6 = inlined_call_operand.vmem [shape: f32[1,128], index: 6, kind: input, shape index: {}]   ;;  %s2030_s7 = inlined_call_operand.vmem [shape: bf16[128,128], index: 7, kind: input, shape index: {}]   ;;  %s2031_s8 = inlined_call_operand.vmem [shape: f32[1,128], index: 8, kind: input, shape index: {}]   ;;  %s2032_s9 = inlined_call_operand.hbm [shape: f32[8,128], index: 9, kind: output, shape index: {}]  }
   0x1   :  { %15 = vsyncpa [#allocation4], 0  ;;  %s1834_s30 = smov [#allocation2]  }
   0x2   :  { %s23_s10 = sshll.u32 %s1834_s30, 4  ;;  %s24_s10 = int_to_ptr.vmem [resolvable:$true] %s23_s10 }
   0x3   :  { %s1798_s11 = scalar_lea.vmem %s24_s10, 14336  ;;  %p1803_p1 = scmp.lt.s32.totalorder %s24_s10, %s24_s10 }
   0x4   :  { %p1799_p0 = scmp.ne.s32.totalorder %s24_s10, %s1798_s11  ;;  %p1804_p2 = scmp.lt.s32.totalorder %s1798_s11, %s1798_s11 }
   0x6   :  { %p1805_p3 = por %p1804_p2, %p1803_p1 }
   0x8   :  { %p1806_p4 = pnand %p1805_p3, %p1799_p0 }
   0xa   :  { %1809 = shalt.err (!%p1806_p4)
}
   0xb   :  { %s1835_s12 = smov 128   ;;  %s1836_s13 = smov 8  }
   0xc   :  { %29 = dma.hbm_to_vmem [thread:$0]  %s2024_s1, 14336, %s24_s10, [#allocation3], %s1835_s12, %s1835_s12, %s1836_s13  }
   0xd   :  { %1830 = dma.done.wait [#allocation3], 14336  }
   0xe   :  { %1831 = vsyncadd [#allocation3], 4294952960  ;;  %v1581_v0 = vld [vmem:[#allocation2 + $0x74] ss:$8 sps:$4 sm:$0xff]   ;;  %v1585_v2 = vld [vmem:[#allocation2 + $0x70] ss:$8 sps:$4 sm:$0xff]  }
   0xf   :  { %v1583_v1 = vld [vmem:[#allocation2 + $0x174] ss:$8 sps:$4 sm:$0xff]   ;;  %749 = vmatprep.subr.bf16.mxu0 %v1581_v0  ;;  %v1586_v3 = vld [vmem:[#allocation2 + $0x170] ss:$8 sps:$4 sm:$0xff]   ;;  %v1587_v4 = vld [vmem:[#allocation2 + $0x64] ss:$8 sps:$4 sm:$0xff]  }
  0x10   :  { %790 = vmatprep.subr.bf16.mxu1 %v1583_v1  ;;  %750 = vmatpush1.bf16.msra.mxu0 %v1585_v2  ;;  %v1589_v5 = vld [vmem:[#allocation2 + $0x164] ss:$8 sps:$4 sm:$0xff]   ;;  %v1591_v6 = vld [vmem:[#allocation2 + $0x60] ss:$8 sps:$4 sm:$0xff]   ;;  %v1593_v8 = vld [vmem:[#allocation2 + $0x54] ss:$8 sps:$4 sm:$0xff]  }
  0x11   :  { %791 = vmatpush1.bf16.msra.mxu1 %v1586_v3  ;;  %751 = vmatprep.subr.bf16.mxu0 %v1587_v4  ;;  %v1592_v7 = vld [vmem:[#allocation2 + $0x160] ss:$8 sps:$4 sm:$0xff]   ;;  %v1595_v9 = vld [vmem:[#allocation2 + $0x154] ss:$8 sps:$4 sm:$0xff]   ;;  %v1597_v10 = vld [vmem:[#allocation2 + $0x50] ss:$8 sps:$4 sm:$0xff]  }
  0x12   :  { %792 = vmatprep.subr.bf16.mxu1 %v1589_v5  ;;  %v1598_v11 = vld [vmem:[#allocation2 + $0x150] ss:$8 sps:$4 sm:$0xff]   ;;  %v1599_v12 = vld [vmem:[#allocation2 + $0x44] ss:$8 sps:$4 sm:$0xff]   ;;  %v1603_v14 = vld [vmem:[#allocation2 + $0x40] ss:$8 sps:$4 sm:$0xff]  }
  0x13   :  { %v1601_v13 = vld [vmem:[#allocation2 + $0x144] ss:$8 sps:$4 sm:$0xff]   ;;  %v1604_v15 = vld [vmem:[#allocation2 + $0x140] ss:$8 sps:$4 sm:$0xff]   ;;  %v1605_v16 = vld [vmem:[#allocation2 + $0x34] ss:$8 sps:$4 sm:$0xff]  }
  0x14   :  { %752 = vmatpush1.bf16.msra.mxu0 %v1591_v6  ;;  %v1607_v17 = vld [vmem:[#allocation2 + $0x134] ss:$8 sps:$4 sm:$0xff]   ;;  %v1609_v18 = vld [vmem:[#allocation2 + $0x30] ss:$8 sps:$4 sm:$0xff]   ;;  %v1611_v20 = vld [vmem:[#allocation2 + $0x24] ss:$8 sps:$4 sm:$0xff]  }
  0x15   :  { %793 = vmatpush1.bf16.msra.mxu1 %v1592_v7  ;;  %753 = vmatprep.subr.bf16.mxu0 %v1593_v8  ;;  %v1610_v19 = vld [vmem:[#allocation2 + $0x130] ss:$8 sps:$4 sm:$0xff]   ;;  %v1613_v21 = vld [vmem:[#allocation2 + $0x124] ss:$8 sps:$4 sm:$0xff]   ;;  %v1615_v22 = vld [vmem:[#allocation2 + $0x20] ss:$8 sps:$4 sm:$0xff]  }
  0x16   :  { %794 = vmatprep.subr.bf16.mxu1 %v1595_v9  ;;  %v1616_v23 = vld [vmem:[#allocation2 + $0x120] ss:$8 sps:$4 sm:$0xff]   ;;  %v1617_v24 = vld [vmem:[#allocation2 + $0x14] ss:$8 sps:$4 sm:$0xff]   ;;  %v1621_v26 = vld [vmem:[#allocation2 + $0x10] ss:$8 sps:$4 sm:$0xff]  }
  0x17   :  { %v1619_v25 = vld [vmem:[#allocation2 + $0x114] ss:$8 sps:$4 sm:$0xff]   ;;  %v1622_v27 = vld [vmem:[#allocation2 + $0x110] ss:$8 sps:$4 sm:$0xff]   ;;  %v1623_v28 = vld [vmem:[#allocation2 + $0x4] ss:$8 sps:$4 sm:$0xff]  }
  0x18   :  { %754 = vmatpush1.bf16.msra.mxu0 %v1597_v10  ;;  %v1625_v29 = vld [vmem:[#allocation2 + $0x104] ss:$8 sps:$4 sm:$0xff]   ;;  %v1627_v30 = vld [vmem:[#allocation2] ss:$8 sps:$4 sm:$0xff]   ;;  %v1629_v32 = vld [vmem:[#allocation2 + $0xf4] ss:$8 sps:$4 sm:$0xff]  }
  0x19   :  { %795 = vmatpush1.bf16.msra.mxu1 %v1598_v11  ;;  %755 = vmatprep.subr.bf16.mxu0 %v1599_v12  ;;  %v1628_v31 = vld [vmem:[#allocation2 + $0x100] ss:$8 sps:$4 sm:$0xff]   ;;  %v1631_v33 = vld [vmem:[#allocation2 + $0x1f4] ss:$8 sps:$4 sm:$0xff]   ;;  %v1633_v34 = vld [vmem:[#allocation2 + $0xf0] ss:$8 sps:$4 sm:$0xff]  }
  0x1a   :  { %796 = vmatprep.subr.bf16.mxu1 %v1601_v13  ;;  %v1634_v35 = vld [vmem:[#allocation2 + $0x1f0] ss:$8 sps:$4 sm:$0xff]   ;;  %v1635_v36 = vld [vmem:[#allocation2 + $0xe4] ss:$8 sps:$4 sm:$0xff]   ;;  %v1639_v38 = vld [vmem:[#allocation2 + $0xe0] ss:$8 sps:$4 sm:$0xff]  }
  0x1b   :  { %v1637_v37 = vld [vmem:[#allocation2 + $0x1e4] ss:$8 sps:$4 sm:$0xff]   ;;  %v1640_v39 = vld [vmem:[#allocation2 + $0x1e0] ss:$8 sps:$4 sm:$0xff]   ;;  %v1641_v40 = vld [vmem:[#allocation2 + $0xd4] ss:$8 sps:$4 sm:$0xff]  }
  0x1c   :  { %756 = vmatpush1.bf16.msra.mxu0 %v1603_v14  ;;  %v1643_v41 = vld [vmem:[#allocation2 + $0x1d4] ss:$8 sps:$4 sm:$0xff]   ;;  %v1645_v42 = vld [vmem:[#allocation2 + $0xd0] ss:$8 sps:$4 sm:$0xff]   ;;  %v1647_v44 = vld [vmem:[#allocation2 + $0xc4] ss:$8 sps:$4 sm:$0xff]  }
  0x1d   :  { %797 = vmatpush1.bf16.msra.mxu1 %v1604_v15  ;;  %757 = vmatprep.subr.bf16.mxu0 %v1605_v16  ;;  %v1646_v43 = vld [vmem:[#allocation2 + $0x1d0] ss:$8 sps:$4 sm:$0xff]   ;;  %v1649_v45 = vld [vmem:[#allocation2 + $0x1c4] ss:$8 sps:$4 sm:$0xff]   ;;  %v1651_v49 = vld [vmem:[#allocation2 + $0xc0] ss:$8 sps:$4 sm:$0xff]  }
  0x1e   :  { %798 = vmatprep.subr.bf16.mxu1 %v1607_v17  ;;  %v48_v46 = vld [vmem:[%s2023_s0] sm:$0xff]  ;;  %v49_v48 = vld [vmem:[%s2023_s0 + $0x8] sm:$0xff]  ;;  %v1653_v52 = vld [vmem:[#allocation2 + $0xb4] ss:$8 sps:$4 sm:$0xff]   ;;  %v1837_v16 = vmov 0   ;;  %vm1840_vm0 = vmmov 0  }
  0x1f   :  { %v1376_v47 = vcombine.high %v48_v46, %v48_v46  ;;  %v1652_v50 = vld [vmem:[#allocation2 + $0x1c0] ss:$8 sps:$4 sm:$0xff]   ;;  %v1378_v51 = vcombine.high %v49_v48, %v49_v48  ;;  %v1655_v53 = vld [vmem:[#allocation2 + $0x1b4] ss:$8 sps:$4 sm:$0xff]   ;;  %v1657_v54 = vld [vmem:[#allocation2 + $0xb0] ss:$8 sps:$4 sm:$0xff]   ;;  %v1375_v6 = vcombine.low %v48_v46, %v48_v46  ;;  %v1377_v7 = vcombine.low %v49_v48, %v49_v48 }
  0x20   :  { %758 = vmatpush1.bf16.msra.mxu0 %v1609_v18  ;;  %v1658_v55 = vld [vmem:[#allocation2 + $0x1b0] ss:$8 sps:$4 sm:$0xff]   ;;  %v1659_v56 = vld [vmem:[#allocation2 + $0xa4] ss:$8 sps:$4 sm:$0xff]   ;;  %v1663_v58 = vld [vmem:[#allocation2 + $0xa0] ss:$8 sps:$4 sm:$0xff]  }
  0x21   :  { %799 = vmatpush1.bf16.msra.mxu1 %v1610_v19  ;;  %759 = vmatprep.subr.bf16.mxu0 %v1611_v20  ;;  %v1661_v57 = vld [vmem:[#allocation2 + $0x1a4] ss:$8 sps:$4 sm:$0xff]   ;;  %v1664_v59 = vld [vmem:[#allocation2 + $0x1a0] ss:$8 sps:$4 sm:$0xff]   ;;  %v1665_v60 = vld [vmem:[#allocation2 + $0x94] ss:$8 sps:$4 sm:$0xff]  }
  0x22   :  { %800 = vmatprep.subr.bf16.mxu1 %v1613_v21  ;;  %781 = vmatprep.mubr.bf16.mxu0 %v1376_v47  ;;  %v1667_v61 = vld [vmem:[#allocation2 + $0x194] ss:$8 sps:$4 sm:$0xff]   ;;  %v1669_v62 = vld [vmem:[#allocation2 + $0x90] ss:$8 sps:$4 sm:$0xff]   ;;  %v1671_v0 = vld [vmem:[#allocation2 + $0x84] ss:$8 sps:$4 sm:$0xff]  }
  0x23   :  { %822 = vmatprep.mubr.bf16.mxu1 %v1378_v51  ;;  %v1670_v63 = vld [vmem:[#allocation2 + $0x190] ss:$8 sps:$4 sm:$0xff]   ;;  %v1673_v1 = vld [vmem:[#allocation2 + $0x184] ss:$8 sps:$4 sm:$0xff]   ;;  %v1675_v2 = vld [vmem:[#allocation2 + $0x80] ss:$8 sps:$4 sm:$0xff]  }
  0x24   :  { %760 = vmatpush1.bf16.msra.mxu0 %v1615_v22  ;;  %v1676_v3 = vld [vmem:[#allocation2 + $0x180] ss:$8 sps:$4 sm:$0xff]   ;;  %v1683_v4 = vld [vmem:[#allocation2 + $0x274] ss:$8 sps:$4 sm:$0xff]   ;;  %v1681_v8 = vld [vmem:[#allocation2 + $0x270] ss:$8 sps:$4 sm:$0xff]  }
  0x25   :  { %801 = vmatpush1.bf16.msra.mxu1 %v1616_v23  ;;  %761 = vmatprep.subr.bf16.mxu0 %v1617_v24  ;;  %v1707_v5 = vld [vmem:[#allocation2 + $0x374] ss:$8 sps:$4 sm:$0xff]   ;;  %v1705_v9 = vld [vmem:[#allocation2 + $0x370] ss:$8 sps:$4 sm:$0xff]   ;;  %v1686_v10 = vld [vmem:[#allocation2 + $0x264] ss:$8 sps:$4 sm:$0xff]  }
  0x26   :  { %802 = vmatprep.subr.bf16.mxu1 %v1619_v25  ;;  %v1713_v11 = vld [vmem:[#allocation2 + $0x364] ss:$8 sps:$4 sm:$0xff]   ;;  %v1684_v12 = vld [vmem:[#allocation2 + $0x260] ss:$8 sps:$4 sm:$0xff]   ;;  %v1689_v14 = vld [vmem:[#allocation2 + $0x254] ss:$8 sps:$4 sm:$0xff]  }
  0x27   :  { %v1711_v13 = vld [vmem:[#allocation2 + $0x360] ss:$8 sps:$4 sm:$0xff]   ;;  %v1719_v15 = vld [vmem:[#allocation2 + $0x354] ss:$8 sps:$4 sm:$0xff]   ;;  %v1687_v17 = vld [vmem:[#allocation2 + $0x250] ss:$8 sps:$4 sm:$0xff]  }
  0x28   :  { %762 = vmatpush1.bf16.msra.mxu0 %v1621_v26  ;;  %v1717_v18 = vld [vmem:[#allocation2 + $0x350] ss:$8 sps:$4 sm:$0xff]   ;;  %v1692_v19 = vld [vmem:[#allocation2 + $0x244] ss:$8 sps:$4 sm:$0xff]   ;;  %v1690_v21 = vld [vmem:[#allocation2 + $0x240] ss:$8 sps:$4 sm:$0xff]  }
  0x29   :  { %803 = vmatpush1.bf16.msra.mxu1 %v1622_v27  ;;  %763 = vmatprep.subr.bf16.mxu0 %v1623_v28  ;;  %v1725_v20 = vld [vmem:[#allocation2 + $0x344] ss:$8 sps:$4 sm:$0xff]   ;;  %v1695_v22 = vld [vmem:[#allocation2 + $0x234] ss:$8 sps:$4 sm:$0xff]   ;;  %v1723_v23 = vld [vmem:[#allocation2 + $0x340] ss:$8 sps:$4 sm:$0xff]  }
  0x2a   :  { %804 = vmatprep.subr.bf16.mxu1 %v1625_v29  ;;  %v1731_v24 = vld [vmem:[#allocation2 + $0x334] ss:$8 sps:$4 sm:$0xff]   ;;  %v1693_v27 = vld [vmem:[#allocation2 + $0x230] ss:$8 sps:$4 sm:$0xff]   ;;  %v1698_v29 = vld [vmem:[#allocation2 + $0x224] ss:$8 sps:$4 sm:$0xff]  }
  0x2b   :  { %v1904_v25 = vld [vmem:[%s2023_s0 + $0x10] sm:$0xff]  ;;  %v1728_v48 = vld [vmem:[#allocation2 + $0x2c4] ss:$8 sps:$4 sm:$0xff]  }
  0x2c   :  { %764 = vmatpush1.bf16.msra.mxu0 %v1627_v30  ;;  %v1380_v26 = vcombine.high %v1904_v25, %v1904_v25  ;;  %v1729_v28 = vld [vmem:[#allocation2 + $0x330] ss:$8 sps:$4 sm:$0xff]   ;;  %v1737_v30 = vld [vmem:[#allocation2 + $0x324] ss:$8 sps:$4 sm:$0xff]   ;;  %v1722_v46 = vld [vmem:[#allocation2 + $0x2d4] ss:$8 sps:$4 sm:$0xff]  }
  0x2d   :  { %805 = vmatpush1.bf16.msra.mxu1 %v1628_v31  ;;  %765 = vmatprep.subr.bf16.mxu0 %v1629_v32  ;;  %v1696_v31 = vld [vmem:[#allocation2 + $0x220] ss:$8 sps:$4 sm:$0xff]   ;;  %v1720_v47 = vld [vmem:[#allocation2 + $0x2d0] ss:$8 sps:$4 sm:$0xff]  }
  0x2e   :  { %806 = vmatprep.subr.bf16.mxu1 %v1631_v33  ;;  %v1735_v32 = vld [vmem:[#allocation2 + $0x320] ss:$8 sps:$4 sm:$0xff]   ;;  %v1701_v33 = vld [vmem:[#allocation2 + $0x214] ss:$8 sps:$4 sm:$0xff]   ;;  %v1732_v51 = vld [vmem:[#allocation2 + $0x2b0] ss:$8 sps:$4 sm:$0xff]  }
  0x30   :  { %766 = vmatpush2.bf16.msra.mxu0 %v1633_v34  ;;  %v1743_v34 = vld [vmem:[#allocation2 + $0x314] ss:$8 sps:$4 sm:$0xff]  }
  0x31   :  { %807 = vmatpush2.bf16.msra.mxu1 %v1634_v35  ;;  %767 = vmatprep.subr.bf16.mxu0 %v1635_v36  ;;  %v1699_v35 = vld [vmem:[#allocation2 + $0x210] ss:$8 sps:$4 sm:$0xff]  }
  0x32   :  { %808 = vmatprep.subr.bf16.mxu1 %v1637_v37  ;;  %v1741_v36 = vld [vmem:[#allocation2 + $0x310] ss:$8 sps:$4 sm:$0xff]   ;;  %v1704_v37 = vld [vmem:[#allocation2 + $0x204] ss:$8 sps:$4 sm:$0xff]  }
  0x34   :  { %768 = vmatpush2.bf16.msra.mxu0 %v1639_v38  ;;  %v1749_v38 = vld [vmem:[#allocation2 + $0x304] ss:$8 sps:$4 sm:$0xff]  }
  0x35   :  { %809 = vmatpush2.bf16.msra.mxu1 %v1640_v39  ;;  %769 = vmatprep.subr.bf16.mxu0 %v1641_v40  ;;  %v1702_v39 = vld [vmem:[#allocation2 + $0x200] ss:$8 sps:$4 sm:$0xff]  }
  0x36   :  { %810 = vmatprep.subr.bf16.mxu1 %v1643_v41  ;;  %v1747_v40 = vld [vmem:[#allocation2 + $0x300] ss:$8 sps:$4 sm:$0xff]   ;;  %v1710_v41 = vld [vmem:[#allocation2 + $0x2f4] ss:$8 sps:$4 sm:$0xff]  }
  0x38   :  { %770 = vmatpush2.bf16.msra.mxu0 %v1645_v42  ;;  %v1753_v42 = vld [vmem:[%s2023_s0 + $0x18] ss:$0 sps:$4 sm:$0xff]  }
  0x39   :  { %811 = vmatpush2.bf16.msra.mxu1 %v1646_v43  ;;  %771 = vmatprep.subr.bf16.mxu0 %v1647_v44  ;;  %v1708_v43 = vld [vmem:[#allocation2 + $0x2f0] ss:$8 sps:$4 sm:$0xff]   ;;  %v1716_v44 = vld [vmem:[#allocation2 + $0x2e4] ss:$8 sps:$4 sm:$0xff]  }
  0x3a   :  { %812 = vmatprep.subr.bf16.mxu1 %v1649_v45  ;;  %v1714_v45 = vld [vmem:[#allocation2 + $0x2e0] ss:$8 sps:$4 sm:$0xff]  }
  0x3c   :  { %772 = vmatpush2.bf16.msra.mxu0 %v1651_v49  ;;  %v1726_v49 = vld [vmem:[#allocation2 + $0x2c0] ss:$8 sps:$4 sm:$0xff]  }
  0x3d   :  { %813 = vmatpush2.bf16.msra.mxu1 %v1652_v50  ;;  %773 = vmatprep.subr.bf16.mxu0 %v1653_v52  ;;  %v1734_v50 = vld [vmem:[#allocation2 + $0x2b4] ss:$8 sps:$4 sm:$0xff]   ;;  %v1740_v52 = vld [vmem:[#allocation2 + $0x2a4] ss:$8 sps:$4 sm:$0xff]  }
  0x3e   :  { %814 = vmatprep.subr.bf16.mxu1 %v1655_v53  ;;  %v1738_v53 = vld [vmem:[#allocation2 + $0x2a0] ss:$8 sps:$4 sm:$0xff]  }
  0x40   :  { %774 = vmatpush2.bf16.msra.mxu0 %v1657_v54  ;;  %v1746_v54 = vld [vmem:[#allocation2 + $0x294] ss:$8 sps:$4 sm:$0xff]  }
  0x41   :  { %815 = vmatpush2.bf16.msra.mxu1 %v1658_v55  ;;  %775 = vmatprep.subr.bf16.mxu0 %v1659_v56  ;;  %v1744_v55 = vld [vmem:[#allocation2 + $0x290] ss:$8 sps:$4 sm:$0xff]   ;;  %v1752_v56 = vld [vmem:[#allocation2 + $0x284] ss:$8 sps:$4 sm:$0xff]  }
  0x42   :  { %816 = vmatprep.subr.bf16.mxu1 %v1661_v57  ;;  %v1750_v57 = vld [vmem:[#allocation2 + $0x280] ss:$8 sps:$4 sm:$0xff]  }
  0x44   :  { %776 = vmatpush2.bf16.msra.mxu0 %v1663_v58  ;;  %v1379_v58 = vcombine.low %v1904_v25, %v1904_v25 }
  0x45   :  { %817 = vmatpush2.bf16.msra.mxu1 %v1664_v59  ;;  %777 = vmatprep.subr.bf16.mxu0 %v1665_v60  ;;  %v1756_v59 = vld [vmem:[%s2027_s4 + $0x78] sm:$0xff]  }
  0x46   :  { %818 = vmatprep.subr.bf16.mxu1 %v1667_v61  ;;  %v1757_v60 = vld [vmem:[%s2027_s4 + $0x38] sm:$0xff]   ;;  %v1758_v61 = vld [vmem:[%s2027_s4 + $0x70] sm:$0xff]  }
  0x48   :  { %778 = vmatpush2.bf16.msra.mxu0 %v1669_v62  ;;  %v1759_v62 = vld [vmem:[%s2027_s4 + $0x30] sm:$0xff]  }
  0x49   :  { %819 = vmatpush2.bf16.msra.mxu1 %v1670_v63  ;;  %779 = vmatprep.subr.bf16.mxu0 %v1671_v0  ;;  %v1760_v63 = vld [vmem:[%s2027_s4 + $0x68] sm:$0xff]  }
  0x4a   :  { %820 = vmatprep.subr.bf16.mxu1 %v1673_v1  ;;  %v1761_v0 = vld [vmem:[%s2027_s4 + $0x28] sm:$0xff]   ;;  %v1762_v1 = vld [vmem:[%s2027_s4 + $0x60] sm:$0xff]  }
  0x4c   :  { %780 = vmatpush2.bf16.msra.mxu0 %v1675_v2  ;;  %v1763_v2 = vld [vmem:[%s2027_s4 + $0x20] sm:$0xff]  }
  0x4d   :  { %821 = vmatpush2.bf16.msra.mxu1 %v1676_v3  ;;  %831 = vmatprep.subr.bf16.mxu0 %v1683_v4  ;;  %v1764_v3 = vld [vmem:[%s2027_s4 + $0x58] sm:$0xff]  }
  0x4e   :  { %872 = vmatprep.subr.bf16.mxu1 %v1707_v5  ;;  %v1765_v4 = vld [vmem:[%s2027_s4 + $0x18] sm:$0xff]   ;;  %v1766_v5 = vld [vmem:[%s2027_s4 + $0x50] sm:$0xff]  }
  0x4f   :  { %782 = vmatmul.mubr.bf16.vlgmr.msra.gmra.mxu0 %v1375_v6  ;;  %v1767_v6 = vld [vmem:[%s2027_s4 + $0x10] sm:$0xff]  }
  0x50   :  { %823 = vmatmul.mubr.bf16.vlgmr.msra.gmra.mxu1 %v1377_v7  ;;  %832 = vmatpush1.bf16.msra.mxu0 %v1681_v8  ;;  %v1768_v7 = vld [vmem:[%s2027_s4 + $0x48] sm:$0xff]  }
  0x51   :  { %873 = vmatpush1.bf16.msra.mxu1 %v1705_v9  ;;  %833 = vmatprep.subr.bf16.mxu0 %v1686_v10  ;;  %v1769_v8 = vld [vmem:[%s2027_s4 + $0x8] sm:$0xff]   ;;  %v1770_v9 = vld [vmem:[%s2027_s4 + $0x40] sm:$0xff]  }
  0x52   :  { %874 = vmatprep.subr.bf16.mxu1 %v1713_v11  ;;  %904 = vmatprep.mubr.bf16.mxu1 %v1837_v16  ;;  %v1771_v10 = vld [vmem:[%s2027_s4] sm:$0xff]  }
  0x53   :  { %863 = vmatprep.mubr.bf16.mxu0 %v1380_v26 }
  0x54   :  { %834 = vmatpush1.bf16.msra.mxu0 %v1684_v12 }
  0x55   :  { %875 = vmatpush1.bf16.msra.mxu1 %v1711_v13  ;;  %835 = vmatprep.subr.bf16.mxu0 %v1689_v14 }
  0x56   :  { %876 = vmatprep.subr.bf16.mxu1 %v1719_v15 }
  0x58   :  { %836 = vmatpush1.bf16.msra.mxu0 %v1687_v17 }
  0x59   :  { %877 = vmatpush1.bf16.msra.mxu1 %v1717_v18  ;;  %837 = vmatprep.subr.bf16.mxu0 %v1692_v19 }
  0x5a   :  { %878 = vmatprep.subr.bf16.mxu1 %v1725_v20 }
  0x5c   :  { %838 = vmatpush1.bf16.msra.mxu0 %v1690_v21 }
  0x5d   :  { %879 = vmatpush1.bf16.msra.mxu1 %v1723_v23  ;;  %839 = vmatprep.subr.bf16.mxu0 %v1695_v22 }
  0x5e   :  { %880 = vmatprep.subr.bf16.mxu1 %v1731_v24 }
  0x60   :  { %840 = vmatpush1.bf16.msra.mxu0 %v1693_v27 }
  0x61   :  { %881 = vmatpush1.bf16.msra.mxu1 %v1729_v28  ;;  %841 = vmatprep.subr.bf16.mxu0 %v1698_v29 }
  0x62   :  { %882 = vmatprep.subr.bf16.mxu1 %v1737_v30 }
  0x64   :  { %842 = vmatpush1.bf16.msra.mxu0 %v1696_v31 }
  0x65   :  { %883 = vmatpush1.bf16.msra.mxu1 %v1735_v32  ;;  %843 = vmatprep.subr.bf16.mxu0 %v1701_v33 }
  0x66   :  { %884 = vmatprep.subr.bf16.mxu1 %v1743_v34 }
  0x68   :  { %844 = vmatpush1.bf16.msra.mxu0 %v1699_v35 }
  0x69   :  { %885 = vmatpush1.bf16.msra.mxu1 %v1741_v36  ;;  %845 = vmatprep.subr.bf16.mxu0 %v1704_v37 }
  0x6a   :  { %886 = vmatprep.subr.bf16.mxu1 %v1749_v38 }
  0x6c   :  { %846 = vmatpush1.bf16.msra.mxu0 %v1702_v39 }
  0x6d   :  { %887 = vmatpush1.bf16.msra.mxu1 %v1747_v40  ;;  %847 = vmatprep.subr.bf16.mxu0 %v1710_v41 }
  0x6e   :  { %1522 = vmatprep.subr.bf16.mxu1 %v1756_v59 }
  0x70   :  { %905 = vmatmul.mubr.bf16.vlgmr.msra.gmra.mxu1 %v1753_v42  ;;  %848 = vmatpush2.bf16.msra.mxu0 %v1708_v43 }
  0x71   :  { %849 = vmatprep.subr.bf16.mxu0 %v1716_v44  ;;  %1523 = vmatpush3.bf16.msra.mxu1 %v1757_v60 }
  0x72   :  { %1524 = vmatprep.subr.bf16.mxu1 %v1758_v61 }
  0x74   :  { %850 = vmatpush2.bf16.msra.mxu0 %v1714_v45 }
  0x75   :  { %851 = vmatprep.subr.bf16.mxu0 %v1722_v46  ;;  %1525 = vmatpush3.bf16.msra.mxu1 %v1759_v62 }
  0x76   :  { %1526 = vmatprep.subr.bf16.mxu1 %v1760_v63 }
  0x78   :  { %852 = vmatpush2.bf16.msra.mxu0 %v1720_v47 }
  0x79   :  { %853 = vmatprep.subr.bf16.mxu0 %v1728_v48  ;;  %1527 = vmatpush3.bf16.msra.mxu1 %v1761_v0 }
  0x7a   :  { %1528 = vmatprep.subr.bf16.mxu1 %v1762_v1 }
  0x7c   :  { %854 = vmatpush2.bf16.msra.mxu0 %v1726_v49 }
  0x7d   :  { %855 = vmatprep.subr.bf16.mxu0 %v1734_v50  ;;  %1529 = vmatpush3.bf16.msra.mxu1 %v1763_v2 }
  0x7e   :  { %1530 = vmatprep.subr.bf16.mxu1 %v1764_v3 }
  0x80   :  { %856 = vmatpush2.bf16.msra.mxu0 %v1732_v51 }
  0x81   :  { %857 = vmatprep.subr.bf16.mxu0 %v1740_v52  ;;  %1531 = vmatpush3.bf16.msra.mxu1 %v1765_v4 }
  0x82   :  { %1532 = vmatprep.subr.bf16.mxu1 %v1766_v5 }
  0x84   :  { %858 = vmatpush2.bf16.msra.mxu0 %v1738_v53 }
  0x85   :  { %859 = vmatprep.subr.bf16.mxu0 %v1746_v54  ;;  %1533 = vmatpush3.bf16.msra.mxu1 %v1767_v6 }
  0x86   :  { %1534 = vmatprep.subr.bf16.mxu1 %v1768_v7  ;;  %v1838_v7 = vmov 1966171168  }
  0x88   :  { %860 = vmatpush2.bf16.msra.mxu0 %v1744_v55 }
  0x89   :  { %861 = vmatprep.subr.bf16.mxu0 %v1752_v56  ;;  %1535 = vmatpush3.bf16.msra.mxu1 %v1769_v8  ;;  %v959_v8 = vunpack.c.l.s4 %v1838_v7 }
  0x8a   :  { %1536 = vmatprep.subr.bf16.mxu1 %v1770_v9  ;;  %v961_v9 = vlaneseq }
  0x8c   :  { %862 = vmatpush2.bf16.msra.mxu0 %v1750_v57 }
  0x8d   :  { %1537 = vmatpush3.bf16.msra.mxu1 %v1771_v10  ;;  %v960_v10 = vunpack.c.0.s8 %v959_v8 }
  0x8f   :  { %864 = vmatmul.mubr.bf16.vlgmr.msra.gmra.mxu0 %v1379_v58 }
 0x10f   :  { %v783_v11 = vpop.f32.mrf.mxu0 }
 0x110   :  { %v824_v12 = vpop.f32.mrf.mxu1 }
 0x111   :  { %v825_v13 = vadd.f32 %v824_v12, %v783_v11  ;;  %v785_v14 = vpop.f32.mrf.mxu0  ;;  %v962_v11 = vshrl.u32 %v961_v9, 7 }
 0x112   :  { %v826_v15 = vpop.f32.mrf.mxu1 }
 0x113   :  { %v787_v16 = vpop.f32.mrf.mxu0  ;;  %v827_v25 = vadd.f32 %v826_v15, %v785_v14 }
 0x114   :  { %v828_v17 = vpop.f32.mrf.mxu1 }
 0x115   :  { %v788_v18 = vpop.f32.mrf.mxu0  ;;  %v913_v17 = vld [vmem:[%s2025_s2] sm:$0x3] }
 0x116   :  { %v829_v19 = vpop.f32.mrf.mxu1 }
 0x117   :  { %v1976_v19 = vsub.s32 0, %v962_v11 }
 0x130   :  { %v906_v20 = vpop.f32.mrf.mxu1 }
 0x132   :  { %v908_v21 = vpop.f32.mrf.mxu1 }
 0x134   :  { %v910_v22 = vpop.f32.mrf.mxu1 }
 0x136   :  { %v911_v23 = vpop.f32.mrf.mxu1 }
 0x14f   :  { %v865_v24 = vpop.f32.mrf.mxu0 }
 0x150   :  { %v866_v26 = vadd.f32 %v865_v24, %v825_v13  ;;  %v963_v13 = vsub.s32 %v960_v10, %v962_v11  ;;  %v1195_v10 = vld [vmem:[%s2028_s5] sm:$0x1]  ;;  %s1841_s5 = smov [#allocation5]  }
 0x151   :  { %v867_v27 = vpop.f32.mrf.mxu0 }
 0x152   :  { %v1961_v28 = vadd.f32 %v906_v20, %v866_v26  ;;  %v868_v29 = vadd.f32 %v867_v27, %v827_v25  ;;  %v981_v20 = vsub.s32 1, %v962_v11 }
 0x153   :  { %v869_v30 = vpop.f32.mrf.mxu0 }
 0x154   :  { %v915_v31 = vrot.slane %v1961_v28, 4  ;;  %v929_v32 = vmul.f32 %v1961_v28, %v1961_v28  ;;  %v1966_v33 = vadd.f32 %v908_v21, %v868_v29  ;;  %v914_v29 = vld [vmem:[%s2026_s3] sm:$0x3] }
 0x155   :  { %v870_v34 = vpop.f32.mrf.mxu0 }
 0x156   :  { %v916_v35 = vadd.f32 %v915_v31, %v1961_v28  ;;  %v931_v36 = vrot.slane %v929_v32, 4  ;;  %v921_v37 = vrot.slane %v1966_v33, 4  ;;  %v930_v38 = vmul.f32 %v1966_v33, %v1966_v33 }
 0x158   :  { %v917_v39 = vrot.slane %v916_v35, 2  ;;  %v932_v40 = vadd.f32 %v931_v36, %v929_v32  ;;  %v922_v41 = vadd.f32 %v921_v37, %v1966_v33  ;;  %v937_v42 = vrot.slane %v930_v38, 4 }
 0x15a   :  { %v918_v43 = vadd.f32 %v917_v39, %v916_v35  ;;  %v933_v44 = vrot.slane %v932_v40, 2  ;;  %v923_v45 = vrot.slane %v922_v41, 2  ;;  %v938_v46 = vadd.f32 %v937_v42, %v930_v38 }
 0x15c   :  { %v919_v47 = vrot.slane %v918_v43, 1  ;;  %v934_v48 = vadd.f32 %v933_v44, %v932_v40  ;;  %v924_v49 = vadd.f32 %v923_v45, %v922_v41  ;;  %v939_v50 = vrot.slane %v938_v46, 2  ;;  %v1775_v45 = vld [vmem:[%s2030_s7 + $0x20] sm:$0xff]  }
 0x15d   :  { %v1839_v44 = vmov 0.0  }
 0x15e   :  { %v920_v51 = vadd.f32 %v919_v47, %v918_v43  ;;  %v935_v52 = vrot.slane %v934_v48, 1  ;;  %v925_v53 = vrot.slane %v924_v49, 1  ;;  %v940_v54 = vadd.f32 %v939_v50, %v938_v46  ;;  %v1772_v43 = vld [vmem:[%s2030_s7 + $0x38] sm:$0xff]   ;;  %1553 = vmatprep.subr.bf16.mxu0 %v1839_v44  ;;  %v1777_v47 = vld [vmem:[%s2030_s7 + $0x10] sm:$0xff]   ;;  %1569 = vmatprep.mubr.msk.bf16.mxu0 %vm1840_vm0, %v1839_v44 }
 0x15f   :  { %1554 = vmatpush3.bf16.msra.mxu0 %v1772_v43  ;;  %v1776_v46 = vld [vmem:[%s2030_s7 + $0x18] sm:$0xff]  }
 0x160   :  { %v927_v55 = vmul.f32 0.125, %v920_v51  ;;  %v936_v56 = vadd.f32 %v935_v52, %v934_v48  ;;  %v941_v57 = vrot.slane %v940_v54, 1  ;;  %v926_v58 = vadd.f32 %v925_v53, %v924_v49  ;;  %1555 = vmatprep.subr.bf16.mxu0 %v1839_v44  ;;  %v1778_v48 = vld [vmem:[%s2030_s7 + $0x8] sm:$0xff]   ;;  %v1779_v49 = vld [vmem:[%s2030_s7] sm:$0xff]  }
 0x162   :  { %v943_v59 = vmul.f32 0.125, %v936_v56  ;;  %v945_v60 = vmul.f32 %v927_v55, %v927_v55  ;;  %v942_v61 = vadd.f32 %v941_v57, %v940_v54  ;;  %v928_v62 = vmul.f32 0.125, %v926_v58 }
 0x164   :  { %v947_v63 = vsub.f32 %v943_v59, %v945_v60  ;;  %v944_v0 = vmul.f32 0.125, %v942_v61  ;;  %v946_v1 = vmul.f32 %v928_v62, %v928_v62 }
 0x166   :  { %v949_v2 = vmax.f32 %v947_v63, 0.0  ;;  %v948_v3 = vsub.f32 %v944_v0, %v946_v1 }
 0x168   :  { %v951_v4 = vadd.f32 1e-05, %v949_v2  ;;  %v950_v5 = vmax.f32 %v948_v3, 0.0 }
 0x16a   :  { %v952_v6 = vadd.f32 1e-05, %v950_v5  ;;  %1780 = vrsqrt.f32 %v951_v4 }
 0x16c   :  { %1782 = vrsqrt.f32 %v952_v6 }
 0x177   :  { %v1781_v12 = vpop.eup %1780 }
 0x179   :  { %v1783_v14 = vpop.eup %1782 }
 0x17a   :  { %v957_v15 = vcombine.low %v1781_v12, %v1783_v14 }
 0x17c   :  { %v964_v16 = vrot.slane %v957_v15, %v963_v13 }
 0x17e   :  { %v971_v18 = vrot.slane %v964_v16, %v963_v13 }
 0x180   :  { %v973_v21 = vmul.f32 %v971_v18, %v913_v17 }
 0x182   :  { %v978_v22 = vrot.slane %v973_v21, %v1976_v19  ;;  %v982_v23 = vrot.slane %v973_v21, %v981_v20 }
 0x184   :  { %v985_v24 = vmul.f32 %v978_v22, %v927_v55  ;;  %v986_v25 = vmul.f32 %v982_v23, %v928_v62  ;;  %v1007_v32 = vmul.f32 %v982_v23, %v1966_v33  ;;  %v1006_v35 = vmul.f32 %v978_v22, %v1961_v28  ;;  %v1773_v28 = vld [vmem:[%s2030_s7 + $0x30] sm:$0xff]   ;;  %v1774_v33 = vld [vmem:[%s2030_s7 + $0x28] sm:$0xff]   ;;  %v1513_v23 = vld [vmem:[%s2031_s8] ss:$0 sm:$0xff] }
 0x185   :  { %1556 = vmatpush3.bf16.msra.mxu0 %v1773_v28 }
 0x186   :  { %v989_v26 = vcombine.low %v985_v24, %v986_v25  ;;  %1557 = vmatprep.subr.bf16.mxu0 %v1839_v44 }
 0x188   :  { %v996_v27 = vrot.slane %v989_v26, %v963_v13 }
 0x189   :  { %1558 = vmatpush3.bf16.msra.mxu0 %v1774_v33 }
 0x18a   :  { %v1003_v30 = vrot.slane %v996_v27, %v963_v13  ;;  %1559 = vmatprep.subr.bf16.mxu0 %v1839_v44  ;;  %v1196_v13 = vld [vmem:[%s2029_s6] sm:$0x1]  ;;  %s1366_s6 = sshll.u32 %s1841_s5, 4  ;;  %s1367_s6 = int_to_ptr.vmem [resolvable:$true] %s1366_s6 }
 0x18b   :  { %s1810_s8 = scalar_lea.vmem %s1367_s6, 128  ;;  %p1815_p6 = scmp.lt.s32.totalorder %s1367_s6, %s1367_s6 }
 0x18c   :  { %v1005_v31 = vsub.f32 %v914_v29, %v1003_v30  ;;  %p1811_p5 = scmp.ne.s32.totalorder %s1367_s6, %s1810_s8  ;;  %p1816_p7 = scmp.lt.s32.totalorder %s1810_s8, %s1810_s8 }
 0x18d   :  { %1560 = vmatpush3.bf16.msra.mxu0 %v1775_v45 }
 0x18e   :  { %v1016_v34 = vrot.slane %v1005_v31, %v981_v20  ;;  %v1012_v36 = vrot.slane %v1005_v31, %v1976_v19  ;;  %1561 = vmatprep.subr.bf16.mxu0 %v1839_v44  ;;  %p1817_p8 = por %p1816_p7, %p1815_p6 }
 0x190   :  { %v1020_v37 = vadd.f32 %v1016_v34, %v1007_v32  ;;  %v1019_v38 = vadd.f32 %v1012_v36, %v1006_v35  ;;  %p1818_p9 = pnand %p1817_p8, %p1811_p5 }
 0x191   :  { %1562 = vmatpush3.bf16.msra.mxu0 %v1776_v46 }
 0x192   :  { %v1495_v39 = vclamps-f32 %v1020_v37, 1.0  ;;  %v1494_v40 = vclamps-f32 %v1019_v38, 1.0  ;;  %1563 = vmatprep.subr.bf16.mxu0 %v1839_v44 }
 0x194   :  { %v1026_v41 = vpack.c.bf16 %v1495_v39, %v1495_v39  ;;  %v1025_v42 = vpack.c.bf16 %v1494_v40, %v1494_v40 }
 0x195   :  { %1564 = vmatpush3.bf16.msra.mxu0 %v1777_v47 }
 0x196   :  { %1187 = vmatprep.mubr.bf16.mxu1 %v1026_v41  ;;  %1565 = vmatprep.subr.bf16.mxu0 %v1839_v44 }
 0x197   :  { %1188 = vmatmul.mubr.bf16.vlgmr.msra.gmra.mxu1 %v1025_v42 }
 0x199   :  { %1566 = vmatpush3.bf16.msra.mxu0 %v1778_v48 }
 0x19a   :  { %1567 = vmatprep.subr.bf16.mxu0 %v1839_v44 }
 0x19d   :  { %1568 = vmatpush3.bf16.msra.mxu0 %v1779_v49 }
 0x257   :  { %v1538_v50 = vpop.f32.mrf.mxu1 }
 0x259   :  { %v1539_v51 = vpop.f32.mrf.mxu1 }
 0x25a   :  { %v1540_v52 = vadd.f32 %v1539_v51, %v1538_v50 }
 0x25b   :  { %v1541_v53 = vpop.f32.mrf.mxu1 }
 0x25c   :  { %v1197_v54 = vrot.slane %v1540_v52, 4  ;;  %v1204_v55 = vmul.f32 %v1540_v52, %v1540_v52 }
 0x25d   :  { %v1542_v56 = vpop.f32.mrf.mxu1 }
 0x25e   :  { %v1198_v57 = vadd.f32 %v1540_v52, %v1197_v54  ;;  %v1205_v58 = vrot.slane %v1204_v55, 4 }
 0x260   :  { %v1199_v59 = vrot.slane %v1198_v57, 2  ;;  %v1206_v60 = vadd.f32 %v1205_v58, %v1204_v55 }
 0x262   :  { %v1200_v61 = vadd.f32 %v1199_v59, %v1198_v57  ;;  %v1207_v62 = vrot.slane %v1206_v60, 2 }
 0x264   :  { %v1201_v63 = vrot.slane %v1200_v61, 1  ;;  %v1208_v0 = vadd.f32 %v1207_v62, %v1206_v60 }
 0x266   :  { %v1202_v1 = vadd.f32 %v1201_v63, %v1200_v61  ;;  %v1209_v2 = vrot.slane %v1208_v0, 1 }
 0x268   :  { %v1203_v3 = vmul.f32 0.125, %v1202_v1  ;;  %v1210_v4 = vadd.f32 %v1209_v2, %v1208_v0 }
 0x26a   :  { %v1211_v5 = vmul.f32 0.125, %v1210_v4  ;;  %v1212_v6 = vmul.f32 %v1203_v3, %v1203_v3 }
 0x26c   :  { %v1213_v7 = vsub.f32 %v1211_v5, %v1212_v6 }
 0x26e   :  { %v1214_v8 = vmax.f32 %v1213_v7, 0.0 }
 0x270   :  { %v1215_v9 = vadd.f32 1e-05, %v1214_v8 }
 0x272   :  { %1784 = vrsqrt.f32 %v1215_v9 }
 0x27f   :  { %v1785_v11 = vpop.eup %1784 }
 0x280   :  { %v1217_v12 = vmul.f32 %v1785_v11, %v1195_v10 }
 0x282   :  { %v1224_v14 = vrot.slane %v1217_v12, %v1976_v19  ;;  %v1218_v15 = vmul.f32 %v1217_v12, %v1203_v3 }
 0x284   :  { %v1219_v16 = vsub.f32 %v1196_v13, %v1218_v15  ;;  %v1226_v17 = vmul.f32 %v1540_v52, %v1224_v14 }
 0x286   :  { %v1231_v18 = vrot.slane %v1219_v16, %v1976_v19 }
 0x288   :  { %v1233_v20 = vadd.f32 %v1231_v18, %v1226_v17 }
 0x28a   :  { %v1512_v21 = vclamps-f32 %v1233_v20, 1.0 }
 0x28c   :  { %v1236_v22 = vpack.c.bf16 %v1512_v21, %v1512_v21 }
 0x28e   :  { %1570 = vmatmul.mubr.bf16.vlgmr.msra.gmra.mxu0 %v1236_v22 }
 0x34e   :  { %v1342_v24 = vpop.f32.mrf.mxu0 }
 0x34f   :  { %v1343_v25 = vadd.f32 %v1513_v23, %v1342_v24 }
 0x350   :  { %v1571_v26 = vpop.f32.mrf.mxu0 }
 0x351   :  { %1348 = vmax.xlane.f32.xlu0 %v1343_v25 }
 0x352   :  { %v1345_v27 = vpop.f32.mrf.mxu0 }
 0x354   :  { %v1572_v29 = vpop.f32.mrf.mxu0 }
 0x3da   :  { %v1349_v30 = vpop.xlane.xlu0 %1348 }
 0x3db   :  { %v1350_v31 = vsub.f32 %v1343_v25, %v1349_v30 }
 0x3dd   :  { %v1351_v32 = vmul.f32 1.442695, %v1350_v31 }
 0x3df   :  { %1786 = vpow2.f32 %v1351_v32 }
 0x3ec   :  { %v1787_v34 = vpop.eup %1786 }
 0x3ed   :  { %1353 = vadd.xlane.f32.xlu0 %v1787_v34 }
 0x476   :  { %v1354_v19 = vpop.xlane.xlu0 %1353 }
 0x477   :  { %1788 = vlog2.f32 %v1354_v19 }
 0x484   :  { %v1789_v35 = vpop.eup %1788 }
 0x485   :  { %v1356_v36 = vmul.f32 0.6931472, %v1789_v35 }
 0x487   :  { %v1357_v37 = vadd.f32 %v1356_v36, %v1349_v30 }
 0x489   :  { %v1358_v38 = vsub.f32 %v1343_v25, %v1357_v37 }
 0x48b   :  { %1359 = vst [vmem:[#allocation5] sm:$0xff] %v1358_v38 }
 0x48c   :  { %1821 = shalt.err (!%p1818_p9)
}
 0x48d   :  { %1369 = dma.vmem_to_hbm [thread:$0]  %s1367_s6, 128, %s2032_s9, [#allocation4]  }
 0x48e   :  { %1832 = dma.done.wait [#allocation4], 128  }
 0x48f   :  { %1833 = vsyncadd [#allocation4], 4294967168 }
 0x490   :  { %1373 = vsyncpa [#allocation3], 1 }
 0x491   :  { %1374 = vsyncpa [#allocation4], 1 }

</bundles_post_ra>
